<compile_context>
chip_gen: v6e
topology: v6e:2x2x1
jax: 0.10.0
libtpu: 0.0.40
codegen_flags: <defaults>
</compile_context>

<pallas_src>
import functools

import jax
import jax.numpy as jnp
import numpy as np
from jax import lax
from jax.experimental import pallas as pl
from jax.experimental.pallas import tpu as pltpu

MAX_CHARS = 16  # fixed word length in char codes (zero padded)


def _tokenize_kernel(words_ref, vocab_ref, v2h_ref, out_ref, acc_ref, *,
                     unk_id, tv):
    # words_ref: [tm, C]   bf16 word tile (resident across the vocab axis)
    # vocab_ref: [C, tv]   bf16 vocab tile, lane-dense (vocab on the 128-lane axis)
    # v2h_ref:   [1, tv]   f32 precomputed 0.5 * ||v||^2 per vocab column
    # out_ref:   [1,1,tm]  int32 token ids, lane-dense (written on last vocab step)
    # acc_ref:   [tm,128]  int32 running-min id accumulator (scratch)
    k = pl.program_id(1)

    @pl.when(k == 0)
    def _():
        acc_ref[...] = jnp.full_like(acc_ref, unk_id)

    w = words_ref[...]                                    # [tm, C] bf16
    vt = vocab_ref[...]                                   # [C, tv] bf16

    # Exact match:  ||w - v||^2 == 0  <=>  w.v == 0.5||w||^2 + 0.5||v||^2
    # All quantities are half-integers < 2^24 for char codes <= 255, C = 16,
    # so the f32 compare is exact.
    wv = jnp.dot(w, vt, preferred_element_type=jnp.float32)   # [tm, tv] MXU
    wf = w.astype(jnp.float32)
    w2h = 0.5 * jnp.sum(wf * wf, axis=-1, keepdims=True)      # [tm, 1]
    match = wv == (w2h + v2h_ref[...])                        # [tm, tv]

    vid = lax.broadcasted_iota(jnp.int32, match.shape, 1) + k * tv
    cand = jnp.where(match, vid, jnp.int32(unk_id))           # [tm, tv]

    # Pure-VPU lane-group min into the [tm, 128] accumulator (no per-tile XLU).
    acc = acc_ref[...]
    for g in range(tv // 128):
        acc = jnp.minimum(acc, cand[:, g * 128:(g + 1) * 128])
    acc_ref[...] = acc

    @pl.when(k == pl.num_programs(1) - 1)
    def _():
        # Single cross-lane reduce per word tile; lane-dense int32 store.
        out_ref[...] = jnp.min(acc_ref[...], axis=-1)[None, None, :]


def tokenize_ids(word_codes, vocab_codes, *, tm=256, tv=2048):
    """word_codes: [N, C] int32, vocab_codes: [V, C] int32 -> [N] int32 ids (UNK == V)."""
    N, C = word_codes.shape
    V, _ = vocab_codes.shape

    # Vocab padded to a multiple of the vocab tile with a -1 sentinel (real
    # char codes are >= 0, so padded columns can never match), stored
    # TRANSPOSED [C, Vpad] so the vocab axis is lane-dense.
    v_pad = max(128, ((V + 127) // 128) * 128)
    tv = min(tv, v_pad)
    v_pad = ((v_pad + tv - 1) // tv) * tv
    vocab_t = jnp.full((C, v_pad), -1.0, dtype=jnp.bfloat16)
    vocab_t = vocab_t.at[:, :V].set(vocab_codes.T.astype(jnp.bfloat16))

    # Hoist vocab half-norms out of the per-step kernel body: [1, Vpad] f32.
    vf = vocab_t.astype(jnp.float32)
    v2h = (0.5 * jnp.sum(vf * vf, axis=0))[None, :]

    # Word tile sized to the batch (>=128 keeps the output store lane-dense).
    tm = min(tm, max(128, ((N + 127) // 128) * 128))
    n_pad = ((N + tm - 1) // tm) * tm
    words_p = jnp.zeros((n_pad, C), dtype=jnp.bfloat16)
    words_p = words_p.at[:N].set(word_codes.astype(jnp.bfloat16))

    grid_m = n_pad // tm
    grid_v = v_pad // tv

    out = pl.pallas_call(
        functools.partial(_tokenize_kernel, unk_id=V, tv=tv),
        out_shape=jax.ShapeDtypeStruct((grid_m, 1, tm), jnp.int32),
        grid=(grid_m, grid_v),
        in_specs=[
            pl.BlockSpec((tm, C), lambda i, k: (i, 0)),    # word tile (resident over k)
            pl.BlockSpec((C, tv), lambda i, k: (0, k)),    # lane-dense vocab tile
            pl.BlockSpec((1, tv), lambda i, k: (0, k)),    # vocab half-norm tile
        ],
        out_specs=pl.BlockSpec((1, 1, tm), lambda i, k: (i, 0, 0)),
        scratch_shapes=[pltpu.VMEM((tm, 128), jnp.int32)],
        compiler_params=pltpu.CompilerParams(
            dimension_semantics=("parallel", "arbitrary")),
    )(words_p, vocab_t, v2h)
    return out.reshape(grid_m * tm)[:N]


def _encode_word(word, max_chars=MAX_CHARS):
    codes = [min(ord(c), 255) for c in word[:max_chars]]   # clamp: bf16/f32-exact range
    codes += [0] * (max_chars - len(codes))
    return codes


if __name__ == "__main__":
    # Deterministic "pretrained" vocab (synthetic, not loaded from disk).
    vocab_words = [
        "the", "quick", "brown", "fox", "jumps", "over", "lazy", "dog",
        "hello", "world", "bert", "token", "model", "layer", "attention",
        "mask", "input", "output", "query", "key", "value", "head", "norm",
        "dense", "gelu", "relu", "adam", "loss", "train", "eval", "data", "text",
    ]  # V = 32
    V = len(vocab_words)
    vocab_codes = jnp.asarray([_encode_word(w) for w in vocab_words], dtype=jnp.int32)

    # Example "input: list[str]" -> batch of sentences, each S whitespace words.
    B, S = 2, 8
    key = jax.random.PRNGKey(0)
    # indices >= V select out-of-vocabulary words (should map to UNK == V)
    idx = jax.random.randint(key, (B, S), 0, V + 4)
    idx_np = np.asarray(idx)
    oov_words = ["zzz0", "zzz1", "zzz2", "zzz3"]
    sentences = [
        [vocab_words[i] if i < V else oov_words[i - V] for i in row]
        for row in idx_np
    ]

    word_codes = jnp.asarray(
        [_encode_word(w) for sent in sentences for w in sent], dtype=jnp.int32
    )  # [B*S, MAX_CHARS]

    token_ids = tokenize_ids(word_codes, vocab_codes)           # [B*S]
    token_ids = jax.block_until_ready(token_ids)
    token_ids_bs = np.asarray(token_ids).reshape(B, S)

    # Pure-python reference check (exact-match lookup semantics).
    vocab_np = np.asarray(vocab_codes)
    words_np = np.asarray(word_codes)
    ref = np.full((B * S,), V, dtype=np.int32)
    for n in range(B * S):
        for k in range(V):
            if np.array_equal(words_np[n], vocab_np[k]):
                ref[n] = k
                break
    assert np.array_equal(ref.reshape(B, S), token_ids_bs), (ref, token_ids_bs)

    print("KERNEL_OK")
</pallas_src>

<mosaic_0001>
module attributes {stable_mosaic.version = 11 : i64} {
  func.func @_tokenize_kernel(%arg0: i32, %arg1: i32, %arg2: memref<128x16xbf16, #tpu.memory_space<vmem>>, %arg3: memref<16x128xbf16, #tpu.memory_space<vmem>>, %arg4: memref<1x128xf32, #tpu.memory_space<vmem>>, %arg5: memref<1x1x128xi32, #tpu.memory_space<vmem>>, %arg6: memref<128x128xi32, #tpu.memory_space<vmem>>) attributes {dimension_semantics = [#tpu.dimension_semantics<parallel>, #tpu.dimension_semantics<arbitrary>], iteration_bounds = array<i64: 1, 1>, scalar_prefetch = 0 : i64, scratch_operands = 1 : i64, tpu.core_type = #tpu.core_type<tc>, window_params = [{transform_indices = @transform_0, window_bounds = array<i64: 128, 16>}, {transform_indices = @transform_1, window_bounds = array<i64: 16, 128>}, {transform_indices = @transform_2, window_bounds = array<i64: 1, 128>}, {transform_indices = @transform_3, window_bounds = array<i64: 1, 1, 128>}]} {
    %c0_i32 = arith.constant 0 : i32
    %0 = arith.cmpi eq, %arg1, %c0_i32 : i32
    %1 = arith.extui %0 : i1 to i32
    %c0_i32_0 = arith.constant 0 : i32
    %2 = arith.cmpi ne, %1, %c0_i32_0 : i32
    scf.if %2 {
      %c32_i32_14 = arith.constant 32 : i32
      %29 = vector.broadcast %c32_i32_14 : i32 to vector<128x128xi32>
      %c0_15 = arith.constant 0 : index
      %c0_16 = arith.constant 0 : index
      %30 = vector.load %arg6[%c0_15, %c0_16] : memref<128x128xi32, #tpu.memory_space<vmem>>, vector<128x128xi32>
      tpu.vector_store %arg6[%c0_15, %c0_16], %29 {strides = array<i32>} : memref<128x128xi32, #tpu.memory_space<vmem>>, vector<128x128xi32>,
    } else {
    }
    %c0 = arith.constant 0 : index
    %c0_1 = arith.constant 0 : index
    %3 = vector.load %arg2[%c0, %c0_1] : memref<128x16xbf16, #tpu.memory_space<vmem>>, vector<128x16xbf16>
    %c0_2 = arith.constant 0 : index
    %c0_3 = arith.constant 0 : index
    %4 = vector.load %arg3[%c0_2, %c0_3] : memref<16x128xbf16, #tpu.memory_space<vmem>>, vector<16x128xbf16>
    %cst = arith.constant dense<0.000000e+00> : vector<128x128xf32>
    %5 = tpu.matmul %3, %4, %cst {dimension_numbers = #tpu.dot_dimension_numbers<[1], [0], [0], [1], [0, 0, 1, 1], [], []>} : vector<128x16xbf16>, vector<16x128xbf16>, vector<128x128xf32> -> vector<128x128xf32>
    %6 = arith.extf %3 : vector<128x16xbf16> to vector<128x16xf32>
    %7 = arith.mulf %6, %6 : vector<128x16xf32>
    %cst_4 = arith.constant dense<0.000000e+00> : vector<128xf32>
    %8 = vector.multi_reduction <add>, %7, %cst_4 [1] : vector<128x16xf32> to vector<128xf32>
    %9 = vector.shape_cast %8 : vector<128xf32> to vector<128x1xf32>
    %cst_5 = arith.constant 5.000000e-01 : f32
    %10 = vector.broadcast %cst_5 : f32 to vector<128x1xf32>
    %11 = arith.mulf %10, %9 : vector<128x1xf32>
    %c0_6 = arith.constant 0 : index
    %c0_7 = arith.constant 0 : index
    %12 = vector.load %arg4[%c0_6, %c0_7] : memref<1x128xf32, #tpu.memory_space<vmem>>, vector<1x128xf32>
    %13 = vector.broadcast %11 : vector<128x1xf32> to vector<128x128xf32>
    %14 = vector.broadcast %12 : vector<1x128xf32> to vector<128x128xf32>
    %15 = arith.addf %13, %14 : vector<128x128xf32>
    %16 = arith.cmpf oeq, %5, %15 : vector<128x128xf32>
    %17 = tpu.iota {dimensions = array<i32: 1>} : vector<128x128xi32>
    %c128_i32 = arith.constant 128 : i32
    %18 = arith.muli %arg1, %c128_i32 : i32
    %19 = vector.broadcast %18 : i32 to vector<128x128xi32>
    %20 = arith.addi %17, %19 : vector<128x128xi32>
    %c32_i32 = arith.constant 32 : i32
    %21 = vector.broadcast %c32_i32 : i32 to vector<128x128xi32>
    %22 = arith.select %16, %20, %21 : vector<128x128xi1>, vector<128x128xi32>
    %c0_8 = arith.constant 0 : index
    %c0_9 = arith.constant 0 : index
    %23 = vector.load %arg6[%c0_8, %c0_9] : memref<128x128xi32, #tpu.memory_space<vmem>>, vector<128x128xi32>
    %24 = arith.minsi %23, %22 : vector<128x128xi32>
    %c0_10 = arith.constant 0 : index
    %c0_11 = arith.constant 0 : index
    %25 = vector.load %arg6[%c0_10, %c0_11] : memref<128x128xi32, #tpu.memory_space<vmem>>, vector<128x128xi32>
    tpu.vector_store %arg6[%c0_10, %c0_11], %24 {strides = array<i32>} : memref<128x128xi32, #tpu.memory_space<vmem>>, vector<128x128xi32>,
    %c0_i32_12 = arith.constant 0 : i32
    %26 = arith.cmpi eq, %arg1, %c0_i32_12 : i32
    %27 = arith.extui %26 : i1 to i32
    %c0_i32_13 = arith.constant 0 : i32
    %28 = arith.cmpi ne, %27, %c0_i32_13 : i32
    scf.if %28 {
      %c0_14 = arith.constant 0 : index
      %c0_15 = arith.constant 0 : index
      %29 = vector.load %arg6[%c0_14, %c0_15] : memref<128x128xi32, #tpu.memory_space<vmem>>, vector<128x128xi32>
      %cst_16 = arith.constant dense<2147483647> : vector<128xi32>
      %30 = vector.multi_reduction <minsi>, %29, %cst_16 [1] : vector<128x128xi32> to vector<128xi32>
      %31 = vector.shape_cast %30 : vector<128xi32> to vector<1x1x128xi32>
      %c0_17 = arith.constant 0 : index
      %c0_18 = arith.constant 0 : index
      %c0_19 = arith.constant 0 : index
      %32 = vector.load %arg5[%c0_17, %c0_18, %c0_19] : memref<1x1x128xi32, #tpu.memory_space<vmem>>, vector<1x1x128xi32>
      tpu.vector_store %arg5[%c0_17, %c0_18, %c0_19], %31 {strides = array<i32>} : memref<1x1x128xi32, #tpu.memory_space<vmem>>, vector<1x1x128xi32>,
    } else {
    }
    return
  }
  func.func @transform_0(%arg0: i32, %arg1: i32) -> (i32, i32) {
    %c0_i32 = arith.constant 0 : i32
    %c0_i32_0 = arith.constant 0 : i32
    return %arg0, %c0_i32 : i32, i32
  }
  func.func @transform_1(%arg0: i32, %arg1: i32) -> (i32, i32) {
    %c0_i32 = arith.constant 0 : i32
    %c0_i32_0 = arith.constant 0 : i32
    return %c0_i32, %arg1 : i32, i32
  }
  func.func @transform_2(%arg0: i32, %arg1: i32) -> (i32, i32) {
    %c0_i32 = arith.constant 0 : i32
    %c0_i32_0 = arith.constant 0 : i32
    return %c0_i32, %arg1 : i32, i32
  }
  func.func @transform_3(%arg0: i32, %arg1: i32) -> (i32, i32, i32) {
    %c0_i32 = arith.constant 0 : i32
    %c0_i32_0 = arith.constant 0 : i32
    %c0_i32_1 = arith.constant 0 : i32
    return %arg0, %c0_i32, %c0_i32_0 : i32, i32, i32
  }
}

</mosaic_0001>

<bundles_post_ra>
// kernel: tpu_custom_call.1
= control target key start
LH: loop header
LB: loop body
LE: loop exit
PB: predicated region body
PF: predicated region fallthrough
CT: control target
= control target key end

     0   :  { %vm100_vm0 = vcmask 130048   ;;  %s1335_s0 = inlined_call_operand.vmem [shape: bf16[128,16], index: 0, kind: input, shape index: {}]   ;;  %s1336_s1 = inlined_call_operand.vmem [shape: bf16[16,128], index: 1, kind: input, shape index: {}]   ;;  %s1337_s2 = inlined_call_operand.vmem [shape: f32[1,128], index: 2, kind: input, shape index: {}]   ;;  %s1338_s3 = inlined_call_operand.hbm [shape: s32[1,1,128], index: 3, kind: output, shape index: {}]  }
   0x1   :  { %v873_v0 = vld [vmem:[%s1336_s1] sm:$0xff]   ;;  %v38_v3 = vld [vmem:[%s1335_s0 + $0x8] sm:$0xff]   ;;  %v40_v5 = vld [vmem:[%s1335_s0 + $0x10] sm:$0xff]  }
   0x2   :  { %v36_v1 = vld [vmem:[%s1335_s0] sm:$0xff]   ;;  %852 = vmatprep.subr.bf16.mxu0 %v873_v0  ;;  %870 = vmatprep.subr.bf16.mxu1 %v873_v0  ;;  %v46_v4 = vld [vmem:[%s1335_s0 + $0x28] sm:$0xff]   ;;  %v224_v6 = vunpack.c.l.bf16 %v38_v3  ;;  %v954_v7 = vld [vmem:[%s1335_s0 + $0x30] sm:$0xff]  }
   0x3   :  { %v44_v2 = vld [vmem:[%s1335_s0 + $0x20] sm:$0xff]   ;;  %853 = vmatpush3.bf16.msra.mxu0 %v873_v0  ;;  %871 = vmatpush3.bf16.msra.mxu1 %v873_v0  ;;  %v222_v8 = vunpack.c.l.bf16 %v36_v1 }
   0x4   :  { %8 = vsyncpa [#allocation4], 0  ;;  %854 = vmatprep.mubr.msk.bf16.mxu0 %vm100_vm0, %v36_v1  ;;  %862 = vmatprep.mubr.msk.bf16.mxu1 %vm100_vm0, %v44_v2  ;;  %v240_v9 = vmul.f32 %v224_v6, %v224_v6  ;;  %v225_v10 = vunpack.c.h.bf16 %v38_v3  ;;  %v223_v12 = vunpack.c.h.bf16 %v36_v1  ;;  %v227_v13 = vunpack.c.h.bf16 %v40_v5  ;;  %v42_v17 = vld [vmem:[%s1335_s0 + $0x18] sm:$0xff]  }
   0x5   :  { %v238_v11 = vmul.f32 %v222_v8, %v222_v8  ;;  %v226_v14 = vunpack.c.l.bf16 %v40_v5  ;;  %v50_v18 = vld [vmem:[%s1335_s0 + $0x38] sm:$0xff]   ;;  %v229_v21 = vunpack.c.h.bf16 %v42_v17  ;;  %v228_v22 = vunpack.c.l.bf16 %v42_v17 }
   0x6   :  { %855 = vmatmul.mubr.msk.bf16.vlgmr.msra.gmra.mxu0 %vm100_vm0, %v38_v3  ;;  %863 = vmatmul.mubr.msk.bf16.vlgmr.msra.gmra.mxu1 %vm100_vm0, %v46_v4  ;;  %v260_v15 = vsel %vm100_vm0, %v240_v9, 0.0  ;;  %v241_v16 = vmul.f32 %v225_v10, %v225_v10  ;;  %v239_v20 = vmul.f32 %v223_v12, %v223_v12  ;;  %v243_v25 = vmul.f32 %v227_v13, %v227_v13 }
   0x7   :  { %858 = vmatprep.mubr.msk.bf16.mxu0 %vm100_vm0, %v40_v5  ;;  %866 = vmatprep.mubr.msk.bf16.mxu1 %vm100_vm0, %v954_v7  ;;  %v254_v19 = vsel %vm100_vm0, %v238_v11, 0.0  ;;  %v242_v26 = vmul.f32 %v226_v14, %v226_v14  ;;  %v245_v27 = vmul.f32 %v229_v21, %v229_v21  ;;  %v244_v28 = vmul.f32 %v228_v22, %v228_v22  ;;  %v992_v5 = vld [vmem:[%s1337_s2] ss:$0 sm:$0xff]  ;;  %s912_s2 = smov [#allocation3]  }
   0x8   :  { %261 = vadd.xlane.f32.xlu1 %v260_v15  ;;  %255 = vadd.xlane.f32.xlu0 %v254_v19  ;;  %v263_v23 = vsel %vm100_vm0, %v241_v16, 0.0  ;;  %v257_v24 = vsel %vm100_vm0, %v239_v20, 0.0  ;;  %v269_v29 = vsel %vm100_vm0, %v243_v25, 0.0  ;;  %v231_v31 = vunpack.c.h.bf16 %v44_v2  ;;  %s801_s30 = sshll.u32 %s912_s2, 4  ;;  %s802_s30 = int_to_ptr.vmem [resolvable:$true] %s801_s30 }
   0x9   :  { %v266_v30 = vsel %vm100_vm0, %v242_v26, 0.0  ;;  %v230_v32 = vunpack.c.l.bf16 %v44_v2  ;;  %v275_v33 = vsel %vm100_vm0, %v245_v27, 0.0  ;;  %v272_v34 = vsel %vm100_vm0, %v244_v28, 0.0  ;;  %s890_s4 = scalar_lea.vmem %s802_s30, 16  ;;  %s894_s5 = scalar_lea.vmem %s802_s30, 32 }
   0xa   :  { %v247_v35 = vmul.f32 %v231_v31, %v231_v31  ;;  %v233_v37 = vunpack.c.h.bf16 %v46_v4  ;;  %v232_v38 = vunpack.c.l.bf16 %v46_v4  ;;  %v235_v39 = vunpack.c.h.bf16 %v954_v7  ;;  %p891_p0 = scmp.ne.s32.totalorder %s802_s30, %s890_s4  ;;  %p895_p1 = scmp.lt.s32.totalorder %s802_s30, %s802_s30 }
   0xb   :  { %v246_v36 = vmul.f32 %v230_v32, %v230_v32  ;;  %v234_v40 = vunpack.c.l.bf16 %v954_v7  ;;  %v237_v45 = vunpack.c.h.bf16 %v50_v18  ;;  %v236_v46 = vunpack.c.l.bf16 %v50_v18  ;;  %p896_p2 = scmp.lt.s32.totalorder %s894_s5, %s890_s4 }
   0xc   :  { %264 = vadd.xlane.f32.xlu1 %v263_v23  ;;  %258 = vadd.xlane.f32.xlu0 %v257_v24  ;;  %v281_v41 = vsel %vm100_vm0, %v247_v35, 0.0  ;;  %v249_v43 = vmul.f32 %v233_v37, %v233_v37  ;;  %v248_v44 = vmul.f32 %v232_v38, %v232_v38  ;;  %v251_v49 = vmul.f32 %v235_v39, %v235_v39 }
   0xd   :  { %v278_v42 = vsel %vm100_vm0, %v246_v36, 0.0  ;;  %v250_v50 = vmul.f32 %v234_v40, %v234_v40  ;;  %v253_v53 = vmul.f32 %v237_v45, %v237_v45  ;;  %v252_v54 = vmul.f32 %v236_v46, %v236_v46  ;;  %p897_p3 = por %p896_p2, %p895_p1 }
   0xe   :  { %859 = vmatmul.mubr.msk.bf16.gmra.mxu0 %vm100_vm0, %v42_v17  ;;  %867 = vmatmul.mubr.msk.bf16.gmra.mxu1 %vm100_vm0, %v50_v18  ;;  %v287_v47 = vsel %vm100_vm0, %v249_v43, 0.0  ;;  %v284_v48 = vsel %vm100_vm0, %v248_v44, 0.0  ;;  %v293_v51 = vsel %vm100_vm0, %v251_v49, 0.0  ;;  %v357_v2 = vlaneseq }
   0xf   :  { %v290_v52 = vsel %vm100_vm0, %v250_v50, 0.0  ;;  %v299_v55 = vsel %vm100_vm0, %v253_v53, 0.0  ;;  %v296_v56 = vsel %vm100_vm0, %v252_v54, 0.0  ;;  %p898_p4 = pnand %p897_p3, %p891_p0 }
  0x10   :  { %270 = vadd.xlane.f32.xlu1 %v269_v29  ;;  %267 = vadd.xlane.f32.xlu0 %v266_v30  ;;  %v995_v9 = vand.u32 127, %v357_v2 }
  0x14   :  { %276 = vadd.xlane.f32.xlu1 %v275_v33  ;;  %273 = vadd.xlane.f32.xlu0 %v272_v34 }
  0x18   :  { %282 = vadd.xlane.f32.xlu1 %v281_v41  ;;  %279 = vadd.xlane.f32.xlu0 %v278_v42 }
  0x1c   :  { %288 = vadd.xlane.f32.xlu1 %v287_v47  ;;  %285 = vadd.xlane.f32.xlu0 %v284_v48 }
  0x20   :  { %294 = vadd.xlane.f32.xlu1 %v293_v51  ;;  %291 = vadd.xlane.f32.xlu0 %v290_v52 }
  0x24   :  { %300 = vadd.xlane.f32.xlu1 %v299_v55  ;;  %297 = vadd.xlane.f32.xlu0 %v296_v56 }
  0x91   :  { %v256_v57 = vpop.xlane.xlu0 %255  ;;  %v262_v58 = vpop.xlane.xlu1 %261 }
  0x92   :  { %v304_v3 = vmul.f32 0.5, %v262_v58  ;;  %v302_v6 = vmul.f32 0.5, %v256_v57 }
  0x94   :  { %v327_v11 = vadd.f32 %v992_v5, %v304_v3  ;;  %v325_v20 = vadd.f32 %v992_v5, %v302_v6 }
  0x95   :  { %v259_v59 = vpop.xlane.xlu0 %258  ;;  %v265_v60 = vpop.xlane.xlu1 %264 }
  0x96   :  { %v305_v8 = vmul.f32 0.5, %v265_v60  ;;  %v303_v14 = vmul.f32 0.5, %v259_v59 }
  0x98   :  { %v328_v25 = vadd.f32 %v992_v5, %v305_v8  ;;  %v326_v33 = vadd.f32 %v992_v5, %v303_v14 }
  0x99   :  { %v268_v61 = vpop.xlane.xlu0 %267  ;;  %v271_v62 = vpop.xlane.xlu1 %270 }
  0x9a   :  { %v306_v15 = vmul.f32 0.5, %v268_v61  ;;  %v307_v18 = vmul.f32 0.5, %v271_v62 }
  0x9c   :  { %v329_v34 = vadd.f32 %v992_v5, %v306_v15  ;;  %v330_v36 = vadd.f32 %v992_v5, %v307_v18 }
  0x9d   :  { %v274_v63 = vpop.xlane.xlu0 %273  ;;  %v277_v0 = vpop.xlane.xlu1 %276 }
  0x9e   :  { %v308_v19 = vmul.f32 0.5, %v274_v63  ;;  %v309_v21 = vmul.f32 0.5, %v277_v0 }
  0xa0   :  { %v331_v35 = vadd.f32 %v992_v5, %v308_v19  ;;  %v332_v42 = vadd.f32 %v992_v5, %v309_v21 }
  0xa1   :  { %v280_v1 = vpop.xlane.xlu0 %279  ;;  %v283_v7 = vpop.xlane.xlu1 %282 }
  0xa2   :  { %v310_v4 = vmul.f32 0.5, %v280_v1  ;;  %v311_v10 = vmul.f32 0.5, %v283_v7 }
  0xa4   :  { %v333_v13 = vadd.f32 %v992_v5, %v310_v4  ;;  %v334_v27 = vadd.f32 %v992_v5, %v311_v10 }
  0xa5   :  { %v286_v12 = vpop.xlane.xlu0 %285  ;;  %v289_v26 = vpop.xlane.xlu1 %288 }
  0xa6   :  { %v312_v29 = vmul.f32 0.5, %v286_v12  ;;  %v313_v43 = vmul.f32 0.5, %v289_v26 }
  0xa8   :  { %v335_v45 = vadd.f32 %v992_v5, %v312_v29  ;;  %v336_v63 = vadd.f32 %v992_v5, %v313_v43 }
  0xa9   :  { %v292_v28 = vpop.xlane.xlu0 %291  ;;  %v295_v44 = vpop.xlane.xlu1 %294 }
  0xaa   :  { %v315_v56 = vmul.f32 0.5, %v295_v44  ;;  %v314_v57 = vmul.f32 0.5, %v292_v28 }
  0xac   :  { %v337_v10 = vadd.f32 %v992_v5, %v314_v57  ;;  %v338_v12 = vadd.f32 %v992_v5, %v315_v56 }
  0xad   :  { %v298_v53 = vpop.xlane.xlu0 %297 }
  0xae   :  { %v316_v1 = vmul.f32 0.5, %v298_v53 }
  0xc6   :  { %v856_v16 = vpop.f32.mrf.mxu0  ;;  %v999_v17 = vpop.f32.mrf.mxu1 }
  0xc7   :  { %vm343_vm1 = vcmp.eq.f32.partialorder %v856_v16, %v327_v11  ;;  %v301_v11 = vpop.xlane.xlu1 %300 }
  0xc8   :  { %v364_v22 = vsel %vm343_vm1, %v995_v9, 32  ;;  %v159_v23 = vpop.f32.mrf.mxu0  ;;  %v191_v24 = vpop.f32.mrf.mxu1  ;;  %vm351_vm1 = vcmp.eq.f32.partialorder %v999_v17, %v335_v45  ;;  %v317_v21 = vmul.f32 0.5, %v301_v11 }
  0xc9   :  { %vm829_vm2 = vcmp.gt.s32.totalorder %v364_v22, 32  ;;  %vm341_vm3 = vcmp.eq.f32.partialorder %v159_v23, %v325_v20  ;;  %vm349_vm4 = vcmp.eq.f32.partialorder %v191_v24, %v333_v13  ;;  %v372_v24 = vsel %vm351_vm1, %v995_v9, 32 }
  0xca   :  { %v362_v30 = vsel %vm341_vm3, %v995_v9, 32  ;;  %v857_v31 = vpop.f32.mrf.mxu0  ;;  %v1006_v32 = vpop.f32.mrf.mxu1  ;;  %v1013_v37 = vsel %vm829_vm2, 32, %v364_v22  ;;  %v370_v38 = vsel %vm349_vm4, %v995_v9, 32  ;;  %v339_v22 = vadd.f32 %v992_v5, %v316_v1 }
  0xcb   :  { %vm827_vm5 = vcmp.gt.s32.totalorder %v362_v30, 32  ;;  %vm344_vm6 = vcmp.eq.f32.partialorder %v857_v31, %v328_v25  ;;  %vm835_vm10 = vcmp.gt.s32.totalorder %v370_v38, 32  ;;  %v490_v52 = vshra.s32 %v1013_v37, 16 }
  0xcc   :  { %v365_v39 = vsel %vm344_vm6, %v995_v9, 32  ;;  %v162_v40 = vpop.f32.mrf.mxu0  ;;  %v194_v41 = vpop.f32.mrf.mxu1  ;;  %v1020_v46 = vsel %vm827_vm5, 32, %v362_v30  ;;  %v1034_v62 = vsel %vm835_vm10, 32, %v370_v38  ;;  %vm352_vm5 = vcmp.eq.f32.partialorder %v1006_v32, %v336_v63 }
  0xcd   :  { %vm830_vm7 = vcmp.gt.s32.totalorder %v365_v39, 32  ;;  %vm342_vm8 = vcmp.eq.f32.partialorder %v162_v40, %v326_v33  ;;  %vm350_vm9 = vcmp.eq.f32.partialorder %v194_v41, %v334_v27  ;;  %v1030_v58 = vcvt.s32.f32 %v490_v52 }
  0xce   :  { %v1022_v47 = vsel %vm830_vm7, 32, %v365_v39  ;;  %v363_v48 = vsel %vm342_vm8, %v995_v9, 32  ;;  %v860_v49 = vpop.f32.mrf.mxu0  ;;  %v1025_v50 = vpop.f32.mrf.mxu1  ;;  %v371_v51 = vsel %vm350_vm9, %v995_v9, 32  ;;  %v462_v59 = vshra.s32 %v1020_v46, 16 }
  0xcf   :  { %vm347_vm11 = vcmp.eq.f32.partialorder %v860_v49, %v331_v35  ;;  %vm828_vm12 = vcmp.gt.s32.totalorder %v363_v48, 32  ;;  %v504_v60 = vshra.s32 %v1022_v47, 16  ;;  %vm836_vm14 = vcmp.gt.s32.totalorder %v371_v51, 32  ;;  %493 = vmin.xlane.f32.xlu0 %v1030_v58 }
  0xd0   :  { %v368_v54 = vsel %vm347_vm11, %v995_v9, 32  ;;  %v175_v55 = vpop.f32.mrf.mxu0  ;;  %v207_v61 = vpop.f32.mrf.mxu1  ;;  %v1037_v3 = vsel %vm828_vm12, 32, %v363_v48  ;;  %v1047_v13 = vcvt.s32.f32 %v462_v59  ;;  %v574_v14 = vshra.s32 %v1034_v62, 16 }
  0xd1   :  { %vm345_vm13 = vcmp.eq.f32.partialorder %v175_v55, %v329_v34  ;;  %vm833_vm15 = vcmp.gt.s32.totalorder %v368_v54, 32  ;;  %v1040_v4 = vcvt.s32.f32 %v504_v60  ;;  %v1052_v16 = vsel %vm836_vm14, 32, %v371_v51 }
  0xd2   :  { %v861_v0 = vpop.f32.mrf.mxu0  ;;  %v366_v6 = vsel %vm345_vm13, %v995_v9, 32  ;;  %v869_v15 = vpop.f32.mrf.mxu1  ;;  %v1055_v18 = vsel %vm833_vm15, 32, %v368_v54  ;;  %v476_v19 = vshra.s32 %v1037_v3, 16  ;;  %vm353_vm6 = vcmp.eq.f32.partialorder %v207_v61, %v337_v10 }
  0xd3   :  { %vm348_vm0 = vcmp.eq.f32.partialorder %v861_v0, %v332_v42  ;;  %507 = vmin.xlane.f32.xlu1 %v1040_v4  ;;  %vm831_vm4 = vcmp.gt.s32.totalorder %v366_v6, 32  ;;  %465 = vmin.xlane.f32.xlu0 %v1047_v13  ;;  %v1069_v26 = vcvt.s32.f32 %v574_v14  ;;  %v588_v28 = vshra.s32 %v1052_v16, 16 }
  0xd4   :  { %v369_v7 = vsel %vm348_vm0, %v995_v9, 32  ;;  %v178_v8 = vpop.f32.mrf.mxu0  ;;  %v1062_v23 = vcvt.s32.f32 %v476_v19  ;;  %v210_v27 = vpop.f32.mrf.mxu1  ;;  %v546_v29 = vshra.s32 %v1055_v18, 16  ;;  %v1073_v30 = vsel %vm831_vm4, 32, %v366_v6 }
  0xd5   :  { %vm346_vm2 = vcmp.eq.f32.partialorder %v178_v8, %v330_v36  ;;  %vm834_vm3 = vcmp.gt.s32.totalorder %v369_v7, 32  ;;  %v373_v31 = vsel %vm352_vm5, %v995_v9, 32  ;;  %v340_v17 = vadd.f32 %v992_v5, %v317_v21 }
  0xd6   :  { %v367_v20 = vsel %vm346_vm2, %v995_v9, 32  ;;  %v1067_v25 = vsel %vm834_vm3, 32, %v369_v7  ;;  %vm837_vm8 = vcmp.gt.s32.totalorder %v372_v24, 32  ;;  %v374_v32 = vsel %vm353_vm6, %v995_v9, 32 }
  0xd7   :  { %vm832_vm7 = vcmp.gt.s32.totalorder %v367_v20, 32  ;;  %479 = vmin.xlane.f32.xlu1 %v1062_v23  ;;  %577 = vmin.xlane.f32.xlu0 %v1069_v26  ;;  %vm354_vm9 = vcmp.eq.f32.partialorder %v210_v27, %v338_v12  ;;  %v1080_v33 = vcvt.s32.f32 %v588_v28  ;;  %v560_v34 = vshra.s32 %v1067_v25, 16 }
  0xd8   :  { %v1083_v35 = vsel %vm832_vm7, 32, %v367_v20  ;;  %vm355_vm10 = vcmp.eq.f32.partialorder %v1025_v50, %v339_v22  ;;  %v1086_v36 = vcvt.s32.f32 %v546_v29  ;;  %v518_v38 = vshra.s32 %v1073_v30, 16 }
  0xd9   :  { %vm838_vm11 = vcmp.gt.s32.totalorder %v373_v31, 32  ;;  %v1090_v5 = vsel %vm837_vm8, 32, %v372_v24  ;;  %vm839_vm12 = vcmp.gt.s32.totalorder %v374_v32, 32  ;;  %v375_v39 = vsel %vm354_vm9, %v995_v9, 32 }
  0xda   :  { %vm356_vm13 = vcmp.eq.f32.partialorder %v869_v15, %v340_v17  ;;  %v1094_v40 = vcvt.s32.f32 %v560_v34  ;;  %v532_v41 = vshra.s32 %v1083_v35, 16  ;;  %v376_v42 = vsel %vm355_vm10, %v995_v9, 32 }
  0xdb   :  { %591 = vmin.xlane.f32.xlu1 %v1080_v33  ;;  %549 = vmin.xlane.f32.xlu0 %v1086_v36  ;;  %v1098_v43 = vsel %vm838_vm11, 32, %v373_v31  ;;  %v1100_v44 = vcvt.s32.f32 %v518_v38  ;;  %v602_v45 = vshra.s32 %v1090_v5, 16  ;;  %v1103_v48 = vsel %vm839_vm12, 32, %v374_v32 }
  0xdc   :  { %vm840_vm14 = vcmp.gt.s32.totalorder %v375_v39, 32  ;;  %v377_v49 = vsel %vm356_vm13, %v995_v9, 32  ;;  %vm841_vm15 = vcmp.gt.s32.totalorder %v376_v42, 32  ;;  %v1108_v50 = vcvt.s32.f32 %v532_v41 }
  0xdd   :  { %v616_v51 = vshra.s32 %v1098_v43, 16  ;;  %v1111_v52 = vsel %vm840_vm14, 32, %v375_v39  ;;  %v1113_v53 = vcvt.s32.f32 %v602_v45  ;;  %v630_v54 = vshra.s32 %v1103_v48, 16 }
  0xde   :  { %vm842_vm0 = vcmp.gt.s32.totalorder %v377_v49, 32  ;;  %v1117_v55 = vsel %vm841_vm15, 32, %v376_v42  ;;  %v644_v57 = vshra.s32 %v1111_v52, 16  ;;  %v489_v7 = vand.u32 65535, %v1013_v37 }
  0xdf   :  { %563 = vmin.xlane.f32.xlu1 %v1094_v40  ;;  %521 = vmin.xlane.f32.xlu0 %v1100_v44  ;;  %v1120_v56 = vcvt.s32.f32 %v616_v51  ;;  %v1123_v59 = vsel %vm842_vm0, 32, %v377_v49  ;;  %v1125_v60 = vcvt.s32.f32 %v630_v54  ;;  %v658_v61 = vshra.s32 %v1117_v55, 16 }
  0xe0   :  { %v1130_v63 = vcvt.s32.f32 %v644_v57  ;;  %v672_v0 = vshra.s32 %v1123_v59, 16  ;;  %v503_v8 = vand.u32 65535, %v1022_v47  ;;  %v491_v11 = vcvt.s32.f32 %v489_v7 }
  0xe1   :  { %v1133_v1 = vcvt.s32.f32 %v658_v61  ;;  %v461_v12 = vand.u32 65535, %v1020_v46  ;;  %v475_v37 = vand.u32 65535, %v1037_v3  ;;  %v573_v22 = vand.u32 65535, %v1034_v62 }
  0xe2   :  { %v1137_v6 = vcvt.s32.f32 %v672_v0  ;;  %v505_v19 = vcvt.s32.f32 %v503_v8  ;;  %v587_v27 = vand.u32 65535, %v1052_v16  ;;  %v545_v28 = vand.u32 65535, %v1055_v18 }
  0xe3   :  { %535 = vmin.xlane.f32.xlu1 %v1108_v50  ;;  %605 = vmin.xlane.f32.xlu0 %v1113_v53  ;;  %v463_v47 = vcvt.s32.f32 %v461_v12  ;;  %v477_v24 = vcvt.s32.f32 %v475_v37  ;;  %v575_v3 = vcvt.s32.f32 %v573_v22  ;;  %v559_v16 = vand.u32 65535, %v1067_v25 }
  0xe4   :  { %v589_v31 = vcvt.s32.f32 %v587_v27  ;;  %v547_v32 = vcvt.s32.f32 %v545_v28  ;;  %v517_v18 = vand.u32 65535, %v1073_v30  ;;  %v531_v25 = vand.u32 65535, %v1083_v35 }
  0xe5   :  { %v561_v38 = vcvt.s32.f32 %v559_v16  ;;  %v601_v30 = vand.u32 65535, %v1090_v5  ;;  %v615_v35 = vand.u32 65535, %v1098_v43  ;;  %v629_v5 = vand.u32 65535, %v1103_v48 }
  0xe6   :  { %v519_v41 = vcvt.s32.f32 %v517_v18  ;;  %v533_v45 = vcvt.s32.f32 %v531_v25  ;;  %v643_v43 = vand.u32 65535, %v1111_v52  ;;  %v657_v48 = vand.u32 65535, %v1117_v55 }
  0xe7   :  { %619 = vmin.xlane.f32.xlu1 %v1120_v56  ;;  %633 = vmin.xlane.f32.xlu0 %v1125_v60  ;;  %v603_v51 = vcvt.s32.f32 %v601_v30  ;;  %v617_v57 = vcvt.s32.f32 %v615_v35  ;;  %v631_v0 = vcvt.s32.f32 %v629_v5  ;;  %v671_v52 = vand.u32 65535, %v1123_v59 }
  0xe8   :  { %v645_v8 = vcvt.s32.f32 %v643_v43  ;;  %v659_v12 = vcvt.s32.f32 %v657_v48  ;;  %v1222_v37 = vshrl.u32 %v357_v2, 7  ;;  %v703_v16 = vadd.s32 4294967272, %v995_v9 }
  0xeb   :  { %647 = vmin.xlane.f32.xlu1 %v1130_v63  ;;  %661 = vmin.xlane.f32.xlu0 %v1133_v1 }
  0xef   :  { %675 = vmin.xlane.f32.xlu1 %v1137_v6 }
 0x158   :  { %v1142_v10 = vpop.xlane.xlu0 %493 }
 0x159   :  { %vm495_vm1 = vcmp.eq.f32.partialorder %v1030_v58, %v1142_v10 }
 0x15a   :  { %v496_v14 = vsel %vm495_vm1, %v491_v11, inf  ;;  %vm694_vm1 = vcmask 130112  }
 0x15b   :  { %497 = vmin.xlane.f32.xlu0 %v496_v14  ;;  %v673_v14 = vcvt.s32.f32 %v671_v52 }
 0x15c   :  { %v1147_v15 = vpop.xlane.xlu1 %507  ;;  %v1152_v20 = vpop.xlane.xlu0 %465 }
 0x15d   :  { %vm509_vm2 = vcmp.eq.f32.partialorder %v1040_v4, %v1147_v15  ;;  %vm467_vm3 = vcmp.eq.f32.partialorder %v1047_v13, %v1152_v20 }
 0x15e   :  { %v510_v21 = vsel %vm509_vm2, %v505_v19, inf  ;;  %v468_v46 = vsel %vm467_vm3, %v463_v47, inf  ;;  %v500_v19 = vcvt.f32.s32 %v1142_v10  ;;  %v514_v47 = vcvt.f32.s32 %v1147_v15 }
 0x15f   :  { %511 = vmin.xlane.f32.xlu1 %v510_v21  ;;  %469 = vmin.xlane.f32.xlu0 %v468_v46  ;;  %vm701_vm2 = vcmask 195712   ;;  %vm708_vm3 = vcmask 261312  }
 0x160   :  { %v1157_v58 = vpop.xlane.xlu1 %479  ;;  %v1160_v4 = vpop.xlane.xlu0 %577 }
 0x161   :  { %vm481_vm4 = vcmp.eq.f32.partialorder %v1062_v23, %v1157_v58  ;;  %vm579_vm5 = vcmp.eq.f32.partialorder %v1069_v26, %v1160_v4  ;;  %v486_v21 = vcvt.f32.s32 %v1157_v58  ;;  %v584_v22 = vcvt.f32.s32 %v1160_v4 }
 0x162   :  { %v482_v62 = vsel %vm481_vm4, %v477_v24, inf  ;;  %v580_v13 = vsel %vm579_vm5, %v575_v3, inf  ;;  %v501_v24 = vshll.u32 %v500_v19, 16  ;;  %v515_v3 = vshll.u32 %v514_v47, 16 }
 0x163   :  { %483 = vmin.xlane.f32.xlu1 %v482_v62  ;;  %581 = vmin.xlane.f32.xlu0 %v580_v13  ;;  %v487_v62 = vshll.u32 %v486_v21, 16  ;;  %v1235_v13 = vshll.u32 %v584_v22, 16  ;;  %v731_v19 = vadd.s32 4294967240, %v995_v9  ;;  %vm715_vm4 = vcmask 326912  }
 0x164   :  { %v1167_v29 = vpop.xlane.xlu1 %591  ;;  %v1170_v17 = vpop.xlane.xlu0 %549  ;;  %vm722_vm5 = vcmask 392512  }
 0x165   :  { %vm593_vm6 = vcmp.eq.f32.partialorder %v1080_v33, %v1167_v29  ;;  %vm551_vm7 = vcmp.eq.f32.partialorder %v1086_v36, %v1170_v17  ;;  %v598_v10 = vcvt.f32.s32 %v1167_v29  ;;  %v556_v2 = vcvt.f32.s32 %v1170_v17 }
 0x166   :  { %v594_v23 = vsel %vm593_vm6, %v589_v31, inf  ;;  %v552_v26 = vsel %vm551_vm7, %v547_v32, inf  ;;  %v689_v32 = vadd.s32 4294967288, %v995_v9  ;;  %vm729_vm6 = vcmask 458112  }
 0x167   :  { %595 = vmin.xlane.f32.xlu1 %v594_v23  ;;  %553 = vmin.xlane.f32.xlu0 %v552_v26  ;;  %v1242_v23 = vadd.s32 4294967232, %v995_v9  ;;  %v1244_v26 = vshll.u32 %v598_v10, 16  ;;  %vm736_vm7 = vcmask 523712  }
 0x168   :  { %v1177_v34 = vpop.xlane.xlu1 %563  ;;  %v1180_v39 = vpop.xlane.xlu0 %521 }
 0x169   :  { %vm565_vm8 = vcmp.eq.f32.partialorder %v1094_v40, %v1177_v34  ;;  %vm523_vm9 = vcmp.eq.f32.partialorder %v1100_v44, %v1180_v39  ;;  %v570_v15 = vcvt.f32.s32 %v1177_v34  ;;  %v1246_v34 = vshll.u32 %v556_v2, 16 }
 0x16a   :  { %v566_v33 = vsel %vm565_vm8, %v561_v38, inf  ;;  %v524_v36 = vsel %vm523_vm9, %v519_v41, inf  ;;  %v687_v38 = vsub.s32 %v995_v9, %v1222_v37  ;;  %vm743_vm8 = vcmask 589312  }
 0x16b   :  { %567 = vmin.xlane.f32.xlu1 %v566_v33  ;;  %525 = vmin.xlane.f32.xlu0 %v524_v36  ;;  %v1250_v41 = vshll.u32 %v570_v15, 16  ;;  %vm750_vm9 = vcmask 654912  }
 0x16c   :  { %v1187_v42 = vpop.xlane.xlu1 %535  ;;  %v1190_v49 = vpop.xlane.xlu0 %605 }
 0x16d   :  { %vm537_vm10 = vcmp.eq.f32.partialorder %v1108_v50, %v1187_v42  ;;  %vm607_vm11 = vcmp.eq.f32.partialorder %v1113_v53, %v1190_v49  ;;  %v542_v58 = vcvt.f32.s32 %v1187_v42  ;;  %v612_v4 = vcvt.f32.s32 %v1190_v49 }
 0x16e   :  { %v538_v40 = vsel %vm537_vm10, %v533_v45, inf  ;;  %v608_v44 = vsel %vm607_vm11, %v603_v51, inf  ;;  %v692_v49 = vsub.s32 %v689_v32, %v1222_v37  ;;  %vm757_vm10 = vcmask 720512  }
 0x16f   :  { %539 = vmin.xlane.f32.xlu1 %v538_v40  ;;  %609 = vmin.xlane.f32.xlu0 %v608_v44  ;;  %v1252_v30 = vshll.u32 %v542_v58, 16  ;;  %v1255_v42 = vshll.u32 %v612_v4, 16  ;;  %v706_v44 = vsub.s32 %v703_v16, %v1222_v37  ;;  %v766_v58 = vadd.s32 4294967200, %v995_v9 }
 0x170   :  { %v1197_v54 = vpop.xlane.xlu1 %619  ;;  %v1200_v61 = vpop.xlane.xlu0 %633  ;;  %vm764_vm11 = vcmask 786112  }
 0x171   :  { %vm621_vm12 = vcmp.eq.f32.partialorder %v1120_v56, %v1197_v54  ;;  %vm635_vm13 = vcmp.eq.f32.partialorder %v1125_v60, %v1200_v61  ;;  %v626_v29 = vcvt.f32.s32 %v1197_v54  ;;  %v640_v33 = vcvt.f32.s32 %v1200_v61 }
 0x172   :  { %v622_v50 = vsel %vm621_vm12, %v617_v57, inf  ;;  %v636_v53 = vsel %vm635_vm13, %v631_v0, inf  ;;  %v741_v54 = vsub.s32 %v1242_v23, %v1222_v37  ;;  %v1266_v61 = vadd.s32 4294967248, %v995_v9 }
 0x173   :  { %623 = vmin.xlane.f32.xlu1 %v622_v50  ;;  %637 = vmin.xlane.f32.xlu0 %v636_v53  ;;  %v1260_v5 = vshll.u32 %v626_v29, 16  ;;  %v1268_v0 = vshll.u32 %v640_v33, 16  ;;  %vm771_vm12 = vcmask 851712   ;;  %vm778_vm13 = vcmask 917312  }
 0x174   :  { %v1207_v7 = vpop.xlane.xlu1 %647  ;;  %v1210_v11 = vpop.xlane.xlu0 %661 }
 0x175   :  { %vm649_vm14 = vcmp.eq.f32.partialorder %v1130_v63, %v1207_v7  ;;  %vm663_vm15 = vcmp.eq.f32.partialorder %v1133_v1, %v1210_v11  ;;  %v696_v63 = vadd.s32 4294967280, %v995_v9  ;;  %v472_v1 = vcvt.f32.s32 %v1152_v20 }
 0x176   :  { %v650_v55 = vsel %vm649_vm14, %v645_v8, inf  ;;  %v664_v56 = vsel %vm663_vm15, %v659_v12, inf  ;;  %v528_v20 = vcvt.f32.s32 %v1180_v39  ;;  %v668_v48 = vcvt.f32.s32 %v1210_v11 }
 0x177   :  { %651 = vmin.xlane.f32.xlu1 %v650_v55  ;;  %665 = vmin.xlane.f32.xlu0 %v664_v56  ;;  %v473_v27 = vshll.u32 %v472_v1, 16  ;;  %v654_v50 = vcvt.f32.s32 %v1207_v7  ;;  %v1273_v55 = vadd.s32 4294967224, %v995_v9  ;;  %v710_v56 = vadd.s32 4294967264, %v995_v9 }
 0x178   :  { %v1216_v60 = vpop.xlane.xlu1 %675  ;;  %v529_v39 = vshll.u32 %v528_v20, 16  ;;  %v727_v7 = vsub.s32 %v1266_v61, %v1222_v37  ;;  %v1282_v1 = vadd.s32 4294967216, %v995_v9  ;;  %v1284_v47 = vshll.u32 %v668_v48, 16 }
 0x179   :  { %vm677_vm0 = vcmp.eq.f32.partialorder %v1137_v6, %v1216_v60  ;;  %v699_v6 = vsub.s32 %v696_v63, %v1222_v37  ;;  %v1286_v21 = vshll.u32 %v654_v50, 16  ;;  %v780_v50 = vadd.s32 4294967184, %v995_v9 }
 0x17a   :  { %v678_v59 = vsel %vm677_vm0, %v673_v14, inf  ;;  %v682_v14 = vcvt.f32.s32 %v1216_v60  ;;  %v755_v15 = vsub.s32 %v1282_v1, %v1222_v37  ;;  %vm785_vm14 = vcmask 982912  }
 0x17b   :  { %679 = vmin.xlane.f32.xlu1 %v678_v59  ;;  %v783_v23 = vsub.s32 %v780_v50, %v1222_v37  ;;  %vm792_vm15 = vcmask 1048512  }
 0x17c   :  { %v1293_v10 = vshll.u32 %v682_v14, 16 }
 0x1e4   :  { %v498_v46 = vpop.xlane.xlu0 %497 }
 0x1e5   :  { %v499_v17 = vcvt.f32.s32 %v498_v46  ;;  %v748_v46 = vsub.s32 %v1273_v55, %v1222_v37 }
 0x1e7   :  { %v502_v40 = vadd.s32 %v501_v24, %v499_v17  ;;  %v713_v24 = vsub.s32 %v710_v56, %v1222_v37 }
 0x1e8   :  { %v512_v28 = vpop.xlane.xlu1 %511  ;;  %v470_v31 = vpop.xlane.xlu0 %469 }
 0x1e9   :  { %v471_v18 = vcvt.f32.s32 %v470_v31  ;;  %v513_v25 = vcvt.f32.s32 %v512_v28  ;;  %v700_v59 = vrot.slane %v502_v40, %v699_v6 }
 0x1eb   :  { %v474_v45 = vadd.s32 %v473_v27, %v471_v18  ;;  %v516_v57 = vadd.s32 %v515_v3, %v513_v25  ;;  %v717_v3 = vadd.s32 4294967256, %v995_v9 }
 0x1ec   :  { %v484_v36 = vpop.xlane.xlu1 %483  ;;  %v1257_v35 = vpop.xlane.xlu0 %581 }
 0x1ed   :  { %v485_v51 = vcvt.f32.s32 %v484_v36  ;;  %v688_v8 = vrot.slane %v474_v45, %v687_v38  ;;  %v707_v63 = vrot.slane %v516_v57, %v706_v44  ;;  %v583_v4 = vcvt.f32.s32 %v1257_v35 }
 0x1ee   :  { %v720_v17 = vsub.s32 %v717_v3, %v1222_v37  ;;  %v759_v35 = vadd.s32 4294967208, %v995_v9 }
 0x1ef   :  { %v488_v43 = vadd.s32 %v487_v62, %v485_v51  ;;  %v734_v62 = vsub.s32 %v731_v19, %v1222_v37 }
 0x1f0   :  { %v596_v53 = vpop.xlane.xlu1 %595  ;;  %v554_v12 = vpop.xlane.xlu0 %553 }
 0x1f1   :  { %v693_v52 = vrot.slane %v488_v43, %v692_v49  ;;  %v555_v2 = vcvt.f32.s32 %v554_v12  ;;  %v597_v32 = vcvt.f32.s32 %v596_v53  ;;  %v586_v49 = vadd.s32 %v1235_v13, %v583_v4 }
 0x1f3   :  { %v695_v11 = vsel %vm694_vm1, %v693_v52, %v688_v8  ;;  %v558_v38 = vadd.s32 %v1246_v34, %v555_v2  ;;  %v600_v34 = vadd.s32 %v1244_v26, %v597_v32  ;;  %v762_v8 = vsub.s32 %v759_v35, %v1222_v37 }
 0x1f4   :  { %v702_v22 = vsel %vm701_vm2, %v700_v59, %v695_v11  ;;  %v568_v60 = vpop.xlane.xlu1 %567  ;;  %v526_v6 = vpop.xlane.xlu0 %525  ;;  %v742_v26 = vrot.slane %v586_v49, %v741_v54 }
 0x1f5   :  { %v709_v27 = vsel %vm708_vm3, %v707_v63, %v702_v22  ;;  %v527_v28 = vcvt.f32.s32 %v526_v6  ;;  %v569_v20 = vcvt.f32.s32 %v568_v60  ;;  %v728_v61 = vrot.slane %v558_v38, %v727_v7 }
 0x1f6   :  { %v749_v14 = vrot.slane %v600_v34, %v748_v46 }
 0x1f7   :  { %v530_v31 = vadd.s32 %v529_v39, %v527_v28  ;;  %v572_v36 = vadd.s32 %v1250_v41, %v569_v20  ;;  %v769_v39 = vsub.s32 %v766_v58, %v1222_v37  ;;  %v773_v41 = vadd.s32 4294967192, %v995_v9 }
 0x1f8   :  { %v540_v16 = vpop.xlane.xlu1 %539  ;;  %v610_v29 = vpop.xlane.xlu0 %609 }
 0x1f9   :  { %v541_v18 = vcvt.f32.s32 %v540_v16  ;;  %v714_v25 = vrot.slane %v530_v31, %v713_v24  ;;  %v611_v33 = vcvt.f32.s32 %v610_v29  ;;  %v735_v53 = vrot.slane %v572_v36, %v734_v62 }
 0x1fa   :  { %v776_v63 = vsub.s32 %v773_v41, %v1222_v37 }
 0x1fb   :  { %v544_v45 = vadd.s32 %v1252_v30, %v541_v18  ;;  %v716_v51 = vsel %vm715_vm4, %v714_v25, %v709_v27  ;;  %v614_v30 = vadd.s32 %v1255_v42, %v611_v33  ;;  %v787_v42 = vadd.s32 4294967176, %v995_v9 }
 0x1fc   :  { %v624_v40 = vpop.xlane.xlu1 %623  ;;  %v638_v57 = vpop.xlane.xlu0 %637 }
 0x1fd   :  { %v721_v44 = vrot.slane %v544_v45, %v720_v17  ;;  %v625_v43 = vcvt.f32.s32 %v624_v40  ;;  %v639_v48 = vcvt.f32.s32 %v638_v57  ;;  %v756_v7 = vrot.slane %v614_v30, %v755_v15 }
 0x1fe   :  { %v790_v3 = vsub.s32 %v787_v42, %v1222_v37 }
 0x1ff   :  { %v723_v13 = vsel %vm722_vm5, %v721_v44, %v716_v51  ;;  %v628_v52 = vadd.s32 %v1260_v5, %v625_v43  ;;  %v642_v55 = vadd.s32 %v1268_v0, %v639_v48 }
 0x200   :  { %v730_v12 = vsel %vm729_vm6, %v728_v61, %v723_v13  ;;  %v652_v56 = vpop.xlane.xlu1 %651  ;;  %v666_v19 = vpop.xlane.xlu0 %665 }
 0x201   :  { %v737_v59 = vsel %vm736_vm7, %v735_v53, %v730_v12  ;;  %v653_v11 = vcvt.f32.s32 %v652_v56  ;;  %v667_v54 = vcvt.f32.s32 %v666_v19  ;;  %v763_v22 = vrot.slane %v628_v52, %v762_v8 }
 0x202   :  { %v744_v5 = vsel %vm743_vm8, %v742_v26, %v737_v59  ;;  %v770_v9 = vrot.slane %v642_v55, %v769_v39 }
 0x203   :  { %v751_v1 = vsel %vm750_vm9, %v749_v14, %v744_v5  ;;  %v656_v0 = vadd.s32 %v1286_v21, %v653_v11  ;;  %v670_v46 = vadd.s32 %v1284_v47, %v667_v54 }
 0x204   :  { %v758_v60 = vsel %vm757_vm10, %v756_v7, %v751_v1  ;;  %v680_v24 = vpop.xlane.xlu1 %679 }
 0x205   :  { %v765_v6 = vsel %vm764_vm11, %v763_v22, %v758_v60  ;;  %v777_v27 = vrot.slane %v656_v0, %v776_v63  ;;  %v681_v2 = vcvt.f32.s32 %v680_v24  ;;  %v784_v28 = vrot.slane %v670_v46, %v783_v23 }
 0x206   :  { %v772_v62 = vsel %vm771_vm12, %v770_v9, %v765_v6 }
 0x207   :  { %v684_v20 = vadd.s32 %v1293_v10, %v681_v2  ;;  %v779_v15 = vsel %vm778_vm13, %v777_v27, %v772_v62 }
 0x208   :  { %v786_v58 = vsel %vm785_vm14, %v784_v28, %v779_v15 }
 0x209   :  { %v791_v21 = vrot.slane %v684_v20, %v790_v3 }
 0x20b   :  { %v793_v47 = vsel %vm792_vm15, %v791_v21, %v786_v58 }
 0x20c   :  { %794 = vst [vmem:[#allocation3] sm:$0x1] %v793_v47 }
 0x20d   :  { %901 = shalt.err (!%p898_p4)
}
 0x20e   :  { %804 = dma.vmem_to_hbm [thread:$0]  %s802_s30, 16, %s1338_s3, [#allocation4]  }
 0x20f   :  { %910 = dma.done.wait [#allocation4], 16  }
 0x210   :  { %911 = vsyncadd [#allocation4], 4294967280 }
 0x211   :  { %808 = vsyncpa [#allocation4], 1 }

</bundles_post_ra>
